<compile_context>
chip_gen: v5e
topology: v5e:2x2
jax: 0.10.0
libtpu: 0.0.40
codegen_flags: <defaults>
</compile_context>

<pallas_src>
import jax
import jax.numpy as jnp
from jax.experimental import pallas as pl
from jax.experimental.pallas import tpu as pltpu


def _round_up(v, m):
    return (v + m - 1) // m * m


def _vmem_cap_bytes():
    """Physical VMEM of this chip minus headroom (conservative off-TPU)."""
    cap = 64 << 20  # smallest across supported generations (v7x per-TC)
    try:
        info = pltpu.get_tpu_info()
        cap = int(getattr(info, "vmem_capacity_bytes", cap))
    except Exception:
        pass
    return max(cap - (8 << 20), 16 << 20)


def _choose_hblk(B, H, W, P, D, C, IW, itemsize, budget_bytes):
    """Largest divisor of H whose double-buffered block footprint fits the
    budget, preferring tiles that give >=4 pipeline steps; blocks stay
    (8,128)-legal (second-minor dims multiple of 8 or full extent)."""

    def step_bytes(hb):
        in_blk = _round_up(hb * W, 8) * _round_up(D, 128)
        out_blk = C * _round_up(hb * P, 8) * _round_up(IW, 128)
        return 2 * (in_blk + out_blk) * itemsize      # x2: double-buffered

    valid = []
    for hb in range(1, H + 1):
        if H % hb:
            continue
        rows_ok = ((hb * W) % 8 == 0) or (hb == H)    # in-block 2nd-minor dim
        out_ok = ((hb * P) % 8 == 0) or (hb == H)     # out-block 2nd-minor dim
        if rows_ok and out_ok:
            valid.append(hb)
    # hb == H is always valid (full-extent block dims), so `valid` is non-empty.
    fitting = [hb for hb in valid if step_bytes(hb) <= budget_bytes]
    if fitting:
        deep = [hb for hb in fitting if B * (H // hb) >= 4]
        hb = max(deep) if deep else max(fitting)
    else:
        hb = min(valid)   # smallest legal tile; caller raises the VMEM limit
    return hb, step_bytes(hb)


def patch_to_image(x, *, patch_size, image_height, image_width, channels):
    B, N, D = x.shape
    P = patch_size
    H = image_height // P
    W = image_width // P
    C = channels
    PP = P * P
    IW = image_width
    assert N == H * W, f"N={N} must equal H*W={H * W}"
    assert D == C * PP, f"D={D} must equal C*P*P={C * PP}"

    itemsize = jnp.dtype(x.dtype).itemsize
    cap = _vmem_cap_bytes()
    budget = min(12 << 20, cap // 3)
    hblk, step_bytes = _choose_hblk(B, H, W, P, D, C, IW, itemsize, budget)
    n_hb = H // hblk

    # TODO(synk): for bf16/int8 inputs, pack adjacent p2 pairs with
    # pltpu.bitcast before the shuffle so sub-32-bit sublane packing does not
    # double the number of partial-tile XLU ops / masked stores.

    def kernel(x_ref, o_ref):
        # x_ref: (1, hblk*W, D)     lane-dense patch rows for this (b, hb) tile
        # o_ref: (1, C, hblk*P, IW) matching NCHW slab
        def per_h(h, carry):
            # One XLU transpose per row-of-patches, amortized over channels.
            r0 = pl.multiple_of(h * W, W)
            row_t = x_ref[0, pl.ds(r0, W), :].T          # (D, W)
            o0 = pl.multiple_of(h * P, P)
            for c in range(C):                            # C is small: unroll
                cs = row_t[c * PP:(c + 1) * PP, :]        # (P*P, W) sublane slice
                rows = jnp.swapaxes(cs.reshape(P, P, W), 1, 2).reshape(P, W * P)
                o_ref[0, c, pl.ds(o0, P), :] = rows.astype(o_ref.dtype)
            return carry

        jax.lax.fori_loop(0, hblk, per_h, 0,
                          unroll=(hblk if hblk <= 4 else 2))

    compiler_kwargs = dict(dimension_semantics=("parallel", "parallel"))
    # Only raise the scoped VMEM limit when the most conservative default
    # (16 MiB on v5e) would not fit; never exceed this chip's physical VMEM.
    if step_bytes > (14 << 20):
        compiler_kwargs["vmem_limit_bytes"] = int(min(step_bytes + (4 << 20), cap))

    bytes_accessed = 2 * B * N * D * itemsize             # pure data movement

    return pl.pallas_call(
        kernel,
        out_shape=jax.ShapeDtypeStruct((B, C, image_height, image_width), x.dtype),
        grid=(B, n_hb),
        in_specs=[pl.BlockSpec((1, hblk * W, D), lambda b, hb: (b, hb, 0))],
        out_specs=pl.BlockSpec((1, C, hblk * P, IW), lambda b, hb: (b, 0, hb, 0)),
        compiler_params=pltpu.CompilerParams(**compiler_kwargs),
        cost_estimate=pl.CostEstimate(
            flops=0, transcendentals=0, bytes_accessed=bytes_accessed),
    )(x)


def patch_to_image_ref(x, *, patch_size, image_height, image_width, channels):
    """Pure-JAX reference replicating the PyTorch forward."""
    B, N, D = x.shape
    P = patch_size
    H = image_height // P
    W = image_width // P
    x = x.reshape(B, H, W, channels, P, P)
    x = jnp.transpose(x, (0, 3, 1, 4, 2, 5))
    return x.reshape(B, channels, image_height, image_width)


if __name__ == "__main__":
    # batch=2, channels=4, image 16x16, patch_size=4 -> N = 16 patches, D = 64
    B, C, IH, IW, P = 2, 4, 16, 16, 4
    H, W = IH // P, IW // P
    N, D = H * W, C * P * P

    key = jax.random.PRNGKey(0)
    x = jax.random.normal(key, (B, N, D), dtype=jnp.float32)

    y = patch_to_image(x, patch_size=P, image_height=IH, image_width=IW, channels=C)
    y = jax.block_until_ready(y)

    y_ref = patch_to_image_ref(
        x, patch_size=P, image_height=IH, image_width=IW, channels=C
    )
    assert y.shape == (B, C, IH, IW), y.shape
    assert bool(jnp.array_equal(y, y_ref)), "Pallas output mismatch vs reference"

    print("KERNEL_OK")
</pallas_src>

<mosaic_0001>
module attributes {stable_mosaic.version = 11 : i64} {
  func.func @kernel(%arg0: i32, %arg1: i32, %arg2: memref<1x8x64xf32, #tpu.memory_space<vmem>>, %arg3: memref<1x4x8x16xf32, #tpu.memory_space<vmem>>) attributes {dimension_semantics = [#tpu.dimension_semantics<parallel>, #tpu.dimension_semantics<parallel>], iteration_bounds = array<i64: 2, 2>, scalar_prefetch = 0 : i64, scratch_operands = 0 : i64, tpu.core_type = #tpu.core_type<tc>, window_params = [{transform_indices = @transform_0, window_bounds = array<i64: 1, 8, 64>}, {transform_indices = @transform_1, window_bounds = array<i64: 1, 4, 8, 16>}]} {
    %c0_i32 = arith.constant 0 : i32
    %c4_i32 = arith.constant 4 : i32
    %0 = arith.muli %c0_i32, %c4_i32 : i32
    %1 = tpu.assume_multiple %0, 4 : i32
    %c0 = arith.constant 0 : index
    %2 = arith.index_cast %1 : i32 to index
    %c0_0 = arith.constant 0 : index
    %3 = vector.load %arg2[%c0, %2, %c0_0] : memref<1x8x64xf32, #tpu.memory_space<vmem>>, vector<1x4x64xf32>
    %4 = vector.shape_cast %3 : vector<1x4x64xf32> to vector<4x64xf32>
    %5 = tpu.transpose %4, [1, 0] : vector<4x64xf32> -> vector<64x4xf32>
    %c4_i32_1 = arith.constant 4 : i32
    %6 = arith.muli %c0_i32, %c4_i32_1 : i32
    %7 = tpu.assume_multiple %6, 4 : i32
    %8 = vector.extract_strided_slice %5 {offsets = [0, 0], sizes = [16, 4], strides = [1, 1]} : vector<64x4xf32> to vector<16x4xf32>
    %9 = vector.shape_cast %8 : vector<16x4xf32> to vector<4x4x4xf32>
    %10 = tpu.transpose %9, [0, 2, 1] : vector<4x4x4xf32> -> vector<4x4x4xf32>
    %11 = vector.shape_cast %10 : vector<4x4x4xf32> to vector<4x16xf32>
    %c0_2 = arith.constant 0 : index
    %c0_3 = arith.constant 0 : index
    %12 = arith.index_cast %7 : i32 to index
    %c0_4 = arith.constant 0 : index
    %13 = vector.load %arg3[%c0_2, %c0_3, %12, %c0_4] : memref<1x4x8x16xf32, #tpu.memory_space<vmem>>, vector<1x1x4x16xf32>
    %14 = vector.shape_cast %13 : vector<1x1x4x16xf32> to vector<4x16xf32>
    %15 = vector.shape_cast %11 : vector<4x16xf32> to vector<1x1x4x16xf32>
    tpu.vector_store %arg3[%c0_2, %c0_3, %12, %c0_4], %15 {strides = array<i32>} : memref<1x4x8x16xf32, #tpu.memory_space<vmem>>, vector<1x1x4x16xf32>,
    %16 = vector.extract_strided_slice %5 {offsets = [16, 0], sizes = [16, 4], strides = [1, 1]} : vector<64x4xf32> to vector<16x4xf32>
    %17 = vector.shape_cast %16 : vector<16x4xf32> to vector<4x4x4xf32>
    %18 = tpu.transpose %17, [0, 2, 1] : vector<4x4x4xf32> -> vector<4x4x4xf32>
    %19 = vector.shape_cast %18 : vector<4x4x4xf32> to vector<4x16xf32>
    %c0_5 = arith.constant 0 : index
    %c1 = arith.constant 1 : index
    %20 = arith.index_cast %7 : i32 to index
    %c0_6 = arith.constant 0 : index
    %21 = vector.load %arg3[%c0_5, %c1, %20, %c0_6] : memref<1x4x8x16xf32, #tpu.memory_space<vmem>>, vector<1x1x4x16xf32>
    %22 = vector.shape_cast %21 : vector<1x1x4x16xf32> to vector<4x16xf32>
    %23 = vector.shape_cast %19 : vector<4x16xf32> to vector<1x1x4x16xf32>
    tpu.vector_store %arg3[%c0_5, %c1, %20, %c0_6], %23 {strides = array<i32>} : memref<1x4x8x16xf32, #tpu.memory_space<vmem>>, vector<1x1x4x16xf32>,
    %24 = vector.extract_strided_slice %5 {offsets = [32, 0], sizes = [16, 4], strides = [1, 1]} : vector<64x4xf32> to vector<16x4xf32>
    %25 = vector.shape_cast %24 : vector<16x4xf32> to vector<4x4x4xf32>
    %26 = tpu.transpose %25, [0, 2, 1] : vector<4x4x4xf32> -> vector<4x4x4xf32>
    %27 = vector.shape_cast %26 : vector<4x4x4xf32> to vector<4x16xf32>
    %c0_7 = arith.constant 0 : index
    %c2 = arith.constant 2 : index
    %28 = arith.index_cast %7 : i32 to index
    %c0_8 = arith.constant 0 : index
    %29 = vector.load %arg3[%c0_7, %c2, %28, %c0_8] : memref<1x4x8x16xf32, #tpu.memory_space<vmem>>, vector<1x1x4x16xf32>
    %30 = vector.shape_cast %29 : vector<1x1x4x16xf32> to vector<4x16xf32>
    %31 = vector.shape_cast %27 : vector<4x16xf32> to vector<1x1x4x16xf32>
    tpu.vector_store %arg3[%c0_7, %c2, %28, %c0_8], %31 {strides = array<i32>} : memref<1x4x8x16xf32, #tpu.memory_space<vmem>>, vector<1x1x4x16xf32>,
    %32 = vector.extract_strided_slice %5 {offsets = [48, 0], sizes = [16, 4], strides = [1, 1]} : vector<64x4xf32> to vector<16x4xf32>
    %33 = vector.shape_cast %32 : vector<16x4xf32> to vector<4x4x4xf32>
    %34 = tpu.transpose %33, [0, 2, 1] : vector<4x4x4xf32> -> vector<4x4x4xf32>
    %35 = vector.shape_cast %34 : vector<4x4x4xf32> to vector<4x16xf32>
    %c0_9 = arith.constant 0 : index
    %c3 = arith.constant 3 : index
    %36 = arith.index_cast %7 : i32 to index
    %c0_10 = arith.constant 0 : index
    %37 = vector.load %arg3[%c0_9, %c3, %36, %c0_10] : memref<1x4x8x16xf32, #tpu.memory_space<vmem>>, vector<1x1x4x16xf32>
    %38 = vector.shape_cast %37 : vector<1x1x4x16xf32> to vector<4x16xf32>
    %39 = vector.shape_cast %35 : vector<4x16xf32> to vector<1x1x4x16xf32>
    tpu.vector_store %arg3[%c0_9, %c3, %36, %c0_10], %39 {strides = array<i32>} : memref<1x4x8x16xf32, #tpu.memory_space<vmem>>, vector<1x1x4x16xf32>,
    %c1_i32 = arith.constant 1 : i32
    %c4_i32_11 = arith.constant 4 : i32
    %40 = arith.muli %c1_i32, %c4_i32_11 : i32
    %41 = tpu.assume_multiple %40, 4 : i32
    %c0_12 = arith.constant 0 : index
    %42 = arith.index_cast %41 : i32 to index
    %c0_13 = arith.constant 0 : index
    %43 = vector.load %arg2[%c0_12, %42, %c0_13] : memref<1x8x64xf32, #tpu.memory_space<vmem>>, vector<1x4x64xf32>
    %44 = vector.shape_cast %43 : vector<1x4x64xf32> to vector<4x64xf32>
    %45 = tpu.transpose %44, [1, 0] : vector<4x64xf32> -> vector<64x4xf32>
    %c4_i32_14 = arith.constant 4 : i32
    %46 = arith.muli %c1_i32, %c4_i32_14 : i32
    %47 = tpu.assume_multiple %46, 4 : i32
    %48 = vector.extract_strided_slice %45 {offsets = [0, 0], sizes = [16, 4], strides = [1, 1]} : vector<64x4xf32> to vector<16x4xf32>
    %49 = vector.shape_cast %48 : vector<16x4xf32> to vector<4x4x4xf32>
    %50 = tpu.transpose %49, [0, 2, 1] : vector<4x4x4xf32> -> vector<4x4x4xf32>
    %51 = vector.shape_cast %50 : vector<4x4x4xf32> to vector<4x16xf32>
    %c0_15 = arith.constant 0 : index
    %c0_16 = arith.constant 0 : index
    %52 = arith.index_cast %47 : i32 to index
    %c0_17 = arith.constant 0 : index
    %53 = vector.load %arg3[%c0_15, %c0_16, %52, %c0_17] : memref<1x4x8x16xf32, #tpu.memory_space<vmem>>, vector<1x1x4x16xf32>
    %54 = vector.shape_cast %53 : vector<1x1x4x16xf32> to vector<4x16xf32>
    %55 = vector.shape_cast %51 : vector<4x16xf32> to vector<1x1x4x16xf32>
    tpu.vector_store %arg3[%c0_15, %c0_16, %52, %c0_17], %55 {strides = array<i32>} : memref<1x4x8x16xf32, #tpu.memory_space<vmem>>, vector<1x1x4x16xf32>,
    %56 = vector.extract_strided_slice %45 {offsets = [16, 0], sizes = [16, 4], strides = [1, 1]} : vector<64x4xf32> to vector<16x4xf32>
    %57 = vector.shape_cast %56 : vector<16x4xf32> to vector<4x4x4xf32>
    %58 = tpu.transpose %57, [0, 2, 1] : vector<4x4x4xf32> -> vector<4x4x4xf32>
    %59 = vector.shape_cast %58 : vector<4x4x4xf32> to vector<4x16xf32>
    %c0_18 = arith.constant 0 : index
    %c1_19 = arith.constant 1 : index
    %60 = arith.index_cast %47 : i32 to index
    %c0_20 = arith.constant 0 : index
    %61 = vector.load %arg3[%c0_18, %c1_19, %60, %c0_20] : memref<1x4x8x16xf32, #tpu.memory_space<vmem>>, vector<1x1x4x16xf32>
    %62 = vector.shape_cast %61 : vector<1x1x4x16xf32> to vector<4x16xf32>
    %63 = vector.shape_cast %59 : vector<4x16xf32> to vector<1x1x4x16xf32>
    tpu.vector_store %arg3[%c0_18, %c1_19, %60, %c0_20], %63 {strides = array<i32>} : memref<1x4x8x16xf32, #tpu.memory_space<vmem>>, vector<1x1x4x16xf32>,
    %64 = vector.extract_strided_slice %45 {offsets = [32, 0], sizes = [16, 4], strides = [1, 1]} : vector<64x4xf32> to vector<16x4xf32>
    %65 = vector.shape_cast %64 : vector<16x4xf32> to vector<4x4x4xf32>
    %66 = tpu.transpose %65, [0, 2, 1] : vector<4x4x4xf32> -> vector<4x4x4xf32>
    %67 = vector.shape_cast %66 : vector<4x4x4xf32> to vector<4x16xf32>
    %c0_21 = arith.constant 0 : index
    %c2_22 = arith.constant 2 : index
    %68 = arith.index_cast %47 : i32 to index
    %c0_23 = arith.constant 0 : index
    %69 = vector.load %arg3[%c0_21, %c2_22, %68, %c0_23] : memref<1x4x8x16xf32, #tpu.memory_space<vmem>>, vector<1x1x4x16xf32>
    %70 = vector.shape_cast %69 : vector<1x1x4x16xf32> to vector<4x16xf32>
    %71 = vector.shape_cast %67 : vector<4x16xf32> to vector<1x1x4x16xf32>
    tpu.vector_store %arg3[%c0_21, %c2_22, %68, %c0_23], %71 {strides = array<i32>} : memref<1x4x8x16xf32, #tpu.memory_space<vmem>>, vector<1x1x4x16xf32>,
    %72 = vector.extract_strided_slice %45 {offsets = [48, 0], sizes = [16, 4], strides = [1, 1]} : vector<64x4xf32> to vector<16x4xf32>
    %73 = vector.shape_cast %72 : vector<16x4xf32> to vector<4x4x4xf32>
    %74 = tpu.transpose %73, [0, 2, 1] : vector<4x4x4xf32> -> vector<4x4x4xf32>
    %75 = vector.shape_cast %74 : vector<4x4x4xf32> to vector<4x16xf32>
    %c0_24 = arith.constant 0 : index
    %c3_25 = arith.constant 3 : index
    %76 = arith.index_cast %47 : i32 to index
    %c0_26 = arith.constant 0 : index
    %77 = vector.load %arg3[%c0_24, %c3_25, %76, %c0_26] : memref<1x4x8x16xf32, #tpu.memory_space<vmem>>, vector<1x1x4x16xf32>
    %78 = vector.shape_cast %77 : vector<1x1x4x16xf32> to vector<4x16xf32>
    %79 = vector.shape_cast %75 : vector<4x16xf32> to vector<1x1x4x16xf32>
    tpu.vector_store %arg3[%c0_24, %c3_25, %76, %c0_26], %79 {strides = array<i32>} : memref<1x4x8x16xf32, #tpu.memory_space<vmem>>, vector<1x1x4x16xf32>,
    %c2_i32 = arith.constant 2 : i32
    return
  }
  func.func @transform_0(%arg0: i32, %arg1: i32) -> (i32, i32, i32) {
    %c0_i32 = arith.constant 0 : i32
    %c0_i32_0 = arith.constant 0 : i32
    return %arg0, %arg1, %c0_i32 : i32, i32, i32
  }
  func.func @transform_1(%arg0: i32, %arg1: i32) -> (i32, i32, i32, i32) {
    %c0_i32 = arith.constant 0 : i32
    %c0_i32_0 = arith.constant 0 : i32
    %c0_i32_1 = arith.constant 0 : i32
    return %arg0, %c0_i32, %arg1, %c0_i32_0 : i32, i32, i32, i32
  }
}

</mosaic_0001>

<bundles_post_ra>
// kernel: tpu_custom_call.1
= control target key start
LH: loop header
LB: loop body
LE: loop exit
PB: predicated region body
PF: predicated region fallthrough
CT: control target
= control target key end

     0   :  { %6 = vsyncpa [#allocation3], 0  ;;  %s2368_s0 = inlined_call_operand.hbm [shape: f32[2,16,64], index: 0, kind: input, shape index: {}]   ;;  %s2369_s1 = inlined_call_operand.hbm [shape: f32[2,4,16,16], index: 1, kind: output, shape index: {}]  }
   0x1   :  { %8 = vsyncpa [#allocation3 + $0x1], 0 }
   0x2   :  { %9 = vsyncpa [#allocation4], 0 }
   0x3   :  { %11 = vsyncpa [#allocation4 + $0x1], 0  ;;  %s2028_s6 = smov 0   ;;  %s2030_s7 = smov 0  }
   0x4   :  { %s2032_s8 = smov 0   ;;  %s2034_s9 = smov 0  }
   0x5   :  { %s2036_s10 = smov 0   ;;  %s2038_s11 = smov 0  }
   0x6   :  { %s2040_s12 = smov 0   ;;  %s2042_s13 = smov 0  }
   0x7 LB: > { %s1772_s14 = sadd.s32 4294967295, %s2009_s13   ;;  %s1773_s15 = sadd.s32 4294967294, %s2009_s13   ;;  %s2009_s13 = sphi %s2042_s13, %s17_s13   ;;  %s2005_s12 = sphi %s2040_s12, %s2380_s12   ;;  %s2001_s11 = sphi %s2038_s11, %s2379_s11   ;;  %s1997_s10 = sphi %s2036_s10, %s2378_s10   ;;  %s1993_s9 = sphi %s2034_s9, %s2377_s9   ;;  %s1989_s8 = sphi %s2032_s8, %s2376_s8   ;;  %s1985_s7 = sphi %s2030_s7, %s2375_s7   ;;  %s1981_s6 = sphi %s2028_s6, %s2374_s6  }
   0x8   : > { %s26_s16 = sadd.s32 1, %s2001_s11  ;;  %s29_s17 = sadd.s32 1, %s2005_s12 }
   0x9   : > { %p27_p0 = scmp.ge.s32.totalorder %s26_s16, 2  ;;  %s38_s18 = sadd.s32 1, %s1989_s8 }
   0xa   : > { %p45_p1 = scmp.ne.s32.totalorder %s1989_s8, %s1985_s7  ;;  %p46_p2 = scmp.eq.s32.totalorder %s2009_s13, 0 }
   0xb   : > { %s2382_s16 = smov (%p27_p0, %s26_s16), 0  ;;  %s2384_s17 = smov (!%p27_p0, %s29_s17), %s2005_s12 }
   0xc   : > { %s34_s19 = ssub.s32 %s2001_s11, %s2382_s16  ;;  %p2081_p3 = por %p46_p2, %p45_p1 }
   0xd   : > { %p31_p4 = scmp.ge.s32.totalorder %s2384_s17, 2  ;;  %p51_p5 = scmp.ne.s32.totalorder %s1985_s7, %s1981_s6 }
   0xe   : > { %p52_p6 = scmp.eq.s32.totalorder %s1772_s14, 0  ;;  %p77_p7 = scmp.eq.s32.totalorder %s1772_s14, 3 }
   0xf   : > { %s2386_s17 = smov (%p31_p4, %s2384_s17), 0  ;;  %p83_p10 = scmp.eq.s32.totalorder %s1773_s15, 3 }
  0x10   : > { %p2089_p8 = por %p52_p6, %p51_p5  ;;  %p2093_p9 = por %p77_p7, %p45_p1 }
  0x11   : > { %s33_s23 = ssub.s32 %s2005_s12, %s2386_s17  ;;  %p2099_p12 = por %p83_p10, %p51_p5 }
  0x12   : > { %s35_s24 = sor.u32 %s34_s19, %s33_s23  ;;  %p1807_p13 = scmp.lt.s32.totalorder %s2009_s13, 4 }
  0x13   : > { %p36_p11 = scmp.eq.s32.totalorder %s35_s24, 0  ;;  %s103_s26 = sand.u32 1, %s1989_s8  }
  0x14   : > { %s1776_s28 = sshll.u32 %s103_s26, 3  ;;  %s1777_s29 = sshll.u32 %s2005_s12, 1 }
  0x15   : > { %s2106_s27 = scalar_select %p36_p11, %s1989_s8, %s38_s18  }
  0x16   : > { %s111_s30 = sadd.s32 %s2001_s11, %s1777_s29  ;;  %s107_s2 = scalar_lea.vmem [#allocation2], %s1776_s28 }
  0x17   : > { %s117_s3 = sshll.u32 %s107_s2, 4  ;;  %s1778_s4 = sshll.u32 %s111_s30, 3  ;;  %s118_s3 = int_to_ptr.vmem [resolvable:$true] %s117_s3 }
  0x18   : > { %s113_s15 = scalar_lea.hbm %s2368_s0, %s1778_s4  ;;  %p1800_p0 = pnand %p1807_p13, %p2081_p3 }
  0x19   : > { %s115_s19 = sshll.u32 %s113_s15, 4  ;;  %p1779_p1 = scmp.ge.s32.totalorder %s2009_s13, 1  ;;  %s116_s19 = int_to_ptr.hbm [resolvable:$true] %s115_s19 }
  0x1a   : > { %s104_s23 = scalar_lea.sflag [#allocation3], %s103_s26  ;;  %p122_p2 = scmp.lt.s32.totalorder %s2009_s13, 5 }
  0x1b   : > { %1802 = dma.hbm_to_vmem [thread:$0]  (!%p1800_p0), %s116_s19, 128, %s118_s3, %s104_s23  }
  0x1c   : > { %p123_p4 = pnand %p1779_p1, %p122_p2 }
  0x1d   : > { %s2118_s18 = sand.u32 (!%p123_p4), 1, %s1985_s7  }
  0x1e   : > { %126 = sbr.rel (%p123_p4) target bundleno = 801 (0x321), region = 24  ;;  %s1780_s24 = sshll.u32 (!%p123_p4), %s2118_s18, 3 }
  0x1f   : > { %s129_s28 = scalar_lea.sflag (!%p123_p4), [#allocation3], %s2118_s18  ;;  %s2122_s29 = scalar_lea.vmem (!%p123_p4), [#allocation2], %s1780_s24 }
  0x23   : > { %1972 = dma.done.wait (%p2089_p8), %s129_s28, 128  }
  0x24   : > { %1974 = vsyncadd (%p2089_p8), %s129_s28, 4294967168  ;;  %v152_v0 = vld [vmem:[%s2122_s29] sm:$0xf]  ;;  %v1785_v15 = vld [vmem:[%s2122_s29 + $0x4] sm:$0xf]  ;;  %vm320_vm0 = vcmask 1047556  }
  0x25   : > { %153 = vxpose.xlu0.b32.start.end [1/1] (short) (narrow) %v152_v0, 64  ;;  %v2011_v23 = vmov 1983009808   ;;  %s2013_s20 = smov 4   ;;  %s2014_s21 = smov 8   ;;  %vm360_vm1 = vcmask 31744  }
  0x26   : > { %v323_v24 = vunpack.c.l.s4 %v2011_v23  ;;  %s2015_s26 = smov 12   ;;  %s1781_s30 = sshll.u32 %s2118_s18, 5  ;;  %vm362_vm2 = vcmask 64512   ;;  %vm364_vm3 = vcmask 97280   ;;  %vm366_vm4 = vcmask 125952  }
  0x27   : > { %s2276_s2 = scalar_lea.vmem [#allocation5], %s1781_s30  ;;  %s1791_s3 = sshll.u32 %s1997_s10, 3 }
  0x28   : > { %v2133_v26 = vunpack.c.0.s8 %v323_v24  ;;  %s1672_s4 = sadd.s32 %s1993_s9, %s1791_s3  ;;  %s1675_s23 = sshll.u32 %s2276_s2, 4  ;;  %s1676_s23 = int_to_ptr.vmem [resolvable:$true] %s1675_s23 }
  0x29   : > { %s1792_s5 = sshll.u32 %s1672_s4, 3  ;;  %s1662_s9 = scalar_lea.sflag [#allocation4], %s2118_s18 }
  0x2a   : > { %s1674_s19 = scalar_lea.hbm %s2369_s1, %s1792_s5 }
  0x2b   : > { %s1677_s24 = sshll.u32 %s1674_s19, 4  ;;  %s1678_s24 = int_to_ptr.hbm [resolvable:$true] %s1677_s24 }
  0x2c   : > { %s1925_s10 = sshra.s32 %s1678_s24, 4  ;;  %s1926_s10 = int_to_ptr.hbm [resolvable:$true] %s1925_s10 }
  0x2d   : > { %s1927_s28 = scalar_lea.hbm %s1926_s10, 32  ;;  %p1932_p7 = scmp.lt.s32.totalorder %s1926_s10, %s2369_s1 }
  0x2e   : > { %p1928_p3 = scmp.ne.s32.totalorder %s1926_s10, %s1927_s28 }
  0x30   : > { %p1929_p5 = pnand %p1928_p3, %p2093_p9 }
  0x32   : > { %p1930_p6 = pneg %p1929_p5 }
  0xc9   : > { %v169_v1 = vpop.trf.xlu0 }
  0xca   : > { %191 = vxpose.xlu0.b32.start.end [1/1] (short) (narrow) %v169_v1, 8  ;;  %v187_v2 = vrot.slane %v169_v1, 4 }
  0xcc   : > { %223 = vxpose.xlu1.b32.start.end [1/1] (short) (narrow) %v187_v2, 8 }
  0xd1   : > { %v170_v3 = vpop.trf.xlu0 }
  0xd2   : > { %v188_v4 = vrot.slane %v170_v3, 4 }
  0xd4   : > { %287 = vxpose.xlu2.b32.start.end [1/1] (short) (narrow) %v188_v4, 8  ;;  %255 = vxpose.xlu1.b32.start.end [1/1] (short) (narrow) %v170_v3, 8  ;;  %v2012_v4 = vmov 1934713408  }
  0xd9   : > { %v171_v5 = vpop.trf.xlu0 }
  0xda   : > { %v370_v6 = vrot.slane %v171_v5, 4 }
  0xdc   : > { %406 = vxpose.xlu2.b32.start.end [1/1] (short) (narrow) %v370_v6, 8  ;;  %374 = vxpose.xlu1.b32.start.end [1/1] (short) (narrow) %v171_v5, 8  ;;  %v337_v5 = vunpack.c.l.s4 %v2012_v4 }
  0xe1   : > { %v172_v7 = vpop.trf.xlu0 }
  0xe2   : > { %v371_v8 = vrot.slane %v172_v7, 4 }
  0xe4   : > { %470 = vxpose.xlu1.b32.start.end [1/1] (short) (narrow) %v371_v8, 8  ;;  %438 = vxpose.xlu2.b32.start.end [1/1] (short) (narrow) %v172_v7, 8 }
  0xe9   : > { %v173_v9 = vpop.trf.xlu0 }
  0xea   : > { %554 = vxpose.xlu0.b32.start.end [1/1] (short) (narrow) %v173_v9, 8  ;;  %v550_v10 = vrot.slane %v173_v9, 4 }
  0xf1   : > { %v174_v11 = vpop.trf.xlu0 }
  0xf2   : > { %586 = vxpose.xlu0.b32.start.end [1/1] (short) (narrow) %v550_v10, 8  ;;  %v551_v14 = vrot.slane %v174_v11, 4 }
  0xf9   : > { %v175_v12 = vpop.trf.xlu0 }
  0xfa   : > { %618 = vxpose.xlu0.b32.start.end [1/1] (short) (narrow) %v174_v11, 8  ;;  %v730_v13 = vrot.slane %v175_v12, 4  ;;  %734 = vxpose.xlu1.b32.start.end [1/1] (short) (narrow) %v175_v12, 8  ;;  %v2152_v11 = vunpack.c.0.s8 %v337_v5 }
  0xfc   : > { %766 = vxpose.xlu2.b32.start.end [1/1] (short) (narrow) %v730_v13, 8 }
 0x101   : > { %v176_v16 = vpop.trf.xlu0 }
 0x102   : > { %650 = vxpose.xlu0.b32.start.end [1/1] (short) (narrow) %v551_v14, 8  ;;  %v731_v17 = vrot.slane %v176_v16, 4 }
 0x104   : > { %798 = vxpose.xlu2.b32.start.end [1/1] (short) (narrow) %v176_v16, 8  ;;  %830 = vxpose.xlu1.b32.start.end [1/1] (short) (narrow) %v731_v17, 8 }
 0x10a   : > { %910 = vxpose.xlu0.b32.start.end [1/1] (short) (narrow) %v1785_v15, 64 }
 0x16d   : > { %v303_v54 = vpop.trf.xlu2 }
 0x16e   : > { %v2130_v18 = vpop.trf.xlu0  ;;  %v326_v58 = vrot.slane %v303_v54, 4 }
 0x170   : > { %v239_v52 = vpop.trf.xlu1 }
 0x171   : > { %v327_v60 = vsel %vm320_vm0, %v326_v58, %v239_v52 }
 0x172   : > { %v331_v63 = vperm.slane %v327_v60, %v2133_v26 }
 0x174   : > { %v332_v6 = vrot.slane %v331_v63, 4 }
 0x175   : > { %v422_v56 = vpop.trf.xlu2 }
 0x178   : > { %v271_v53 = vpop.trf.xlu1 }
 0x179   : > { %v319_v61 = vrot.slane %v271_v53, 4 }
 0x17b   : > { %v321_v0 = vsel %vm320_vm0, %v319_v61, %v2130_v18 }
 0x17c   : > { %v325_v7 = vperm.slane %v321_v0, %v2133_v26 }
 0x17d   : > { %v454_v59 = vpop.trf.xlu2 }
 0x17e   : > { %v502_v3 = vrot.slane %v454_v59, 4  ;;  %v333_v12 = vsel %vm320_vm0, %v332_v6, %v325_v7 }
 0x17f   : > { %v2157_v15 = vperm.slane %v333_v12, %v2152_v11 }
 0x180   : > { %v390_v55 = vpop.trf.xlu1 }
 0x181   : > { %v503_v10 = vsel %vm320_vm0, %v502_v3, %v390_v55  ;;  %v344_v18 = vrot.slane %v2157_v15, 4 }
 0x182   : > { %v507_v14 = vperm.slane %v503_v10, %v2133_v26 }
 0x188   : > { %v486_v57 = vpop.trf.xlu1 }
 0x189   : > { %v508_v62 = vrot.slane %v486_v57, 4 }
 0x18b   : > { %v509_v2 = vsel %vm320_vm0, %v508_v62, %v422_v56 }
 0x18c   : > { %v513_v8 = vperm.slane %v509_v2, %v2133_v26 }
 0x18e   : > { %v570_v19 = vpop.trf.xlu0  ;;  %v514_v13 = vrot.slane %v513_v8, 4 }
 0x190   : > { %v515_v17 = vsel %vm320_vm0, %v514_v13, %v507_v14 }
 0x195   : > { %v782_v9 = vpop.trf.xlu2 }
 0x196   : > { %v602_v20 = vpop.trf.xlu0 }
 0x19e   : > { %v634_v21 = vpop.trf.xlu0  ;;  %v750_v1 = vpop.trf.xlu1 }
 0x19f   : > { %v682_v22 = vrot.slane %v634_v21, 4  ;;  %v2162_v21 = vperm.slane %v515_v17, %v2152_v11 }
 0x1a1   : > { %v683_v25 = vsel %vm320_vm0, %v682_v22, %v570_v19  ;;  %v345_v22 = vsel %vm320_vm0, 0.0, %v344_v18 }
 0x1a2   : > { %v687_v27 = vperm.slane %v683_v25, %v2133_v26  ;;  %v334_v25 = vrot.slane %v325_v7, 4 }
 0x1a4   : > { %v696_v31 = vrot.slane %v687_v27, 4 }
 0x1a6   : > { %v666_v28 = vpop.trf.xlu0 }
 0x1a7   : > { %v688_v29 = vrot.slane %v666_v28, 4 }
 0x1a8   : > { %v846_v16 = vpop.trf.xlu1 }
 0x1a9   : > { %v689_v30 = vsel %vm320_vm0, %v688_v29, %v602_v20  ;;  %v868_v19 = vrot.slane %v846_v16, 4  ;;  %v814_v20 = vpop.trf.xlu2 }
 0x1aa   : > { %v693_v32 = vperm.slane %v689_v30, %v2133_v26  ;;  %v862_v24 = vrot.slane %v814_v20, 4  ;;  %v335_v30 = vsel %vm320_vm0, %v331_v63, %v334_v25 }
 0x1ab   : > { %v869_v23 = vsel %vm320_vm0, %v868_v19, %v782_v9 }
 0x1ac   : > { %v694_v33 = vrot.slane %v693_v32, 4  ;;  %v2139_v34 = vsel %vm320_vm0, %v693_v32, %v696_v31  ;;  %v873_v28 = vperm.slane %v869_v23, %v2133_v26  ;;  %v863_v29 = vsel %vm320_vm0, %v862_v24, %v750_v1 }
 0x1ad   : > { %v516_v32 = vrot.slane %v507_v14, 4 }
 0x1ae   : > { %v926_v35 = vpop.trf.xlu0  ;;  %v2142_v36 = vsel %vm320_vm0, %v694_v33, %v687_v27  ;;  %v526_v27 = vrot.slane %v2162_v21, 4  ;;  %v874_v33 = vrot.slane %v873_v28, 4 }
 0x1af   : > { %948 = vxpose.xlu0.b32.start.end [1/1] (short) (narrow) %v926_v35, 8  ;;  %v944_v37 = vrot.slane %v926_v35, 4  ;;  %v867_v35 = vperm.slane %v863_v29, %v2133_v26  ;;  %v2208_v7 = vperm.slane %v2142_v36, %v2152_v11 }
 0x1b0   : > { %v527_v31 = vsel %vm320_vm0, 0.0, %v526_v27 }
 0x1b1   : > { %980 = vxpose.xlu1.b32.start.end [1/1] (short) (narrow) %v944_v37, 8  ;;  %v343_v37 = vperm.slane %v335_v30, %v2152_v11  ;;  %v706_v10 = vrot.slane %v2208_v7, 4 }
 0x1b3   : > { %v346_v57 = vrot.slane %v343_v37, 4  ;;  %v707_v16 = vsel %vm320_vm0, 0.0, %v706_v10 }
 0x1b5   : > { %v347_v61 = vsel %vm320_vm0, 0.0, %v346_v57 }
 0x1b6   : > { %v927_v38 = vpop.trf.xlu0 }
 0x1b7   : > { %1012 = vxpose.xlu2.b32.start.end [1/1] (short) (narrow) %v927_v38, 8  ;;  %v945_v39 = vrot.slane %v927_v38, 4  ;;  %v705_v38 = vperm.slane %v2139_v34, %v2152_v11 }
 0x1be   : > { %v928_v40 = vpop.trf.xlu0 }
 0x1bf   : > { %1044 = vxpose.xlu2.b32.start.end [1/1] (short) (narrow) %v945_v39, 8  ;;  %1127 = vxpose.xlu1.b32.start.end [1/1] (short) (narrow) %v928_v40, 8  ;;  %v1123_v41 = vrot.slane %v928_v40, 4  ;;  %v517_v39 = vsel %vm320_vm0, %v513_v8, %v516_v32  ;;  %v875_v40 = vsel %vm320_vm0, %v874_v33, %v867_v35 }
 0x1c1   : > { %1159 = vxpose.xlu0.b32.start.end [1/1] (short) (narrow) %v1123_v41, 8  ;;  %v708_v41 = vrot.slane %v705_v38, 4 }
 0x1c6   : > { %v929_v42 = vpop.trf.xlu0 }
 0x1c7   : > { %1191 = vxpose.xlu2.b32.start.end [1/1] (short) (narrow) %v929_v42, 8  ;;  %v1124_v43 = vrot.slane %v929_v42, 4  ;;  %v525_v42 = vperm.slane %v517_v39, %v2152_v11 }
 0x1c9   : > { %1223 = vxpose.xlu0.b32.start.end [1/1] (short) (narrow) %v1124_v43, 8  ;;  %v2182_v43 = vperm.slane %v875_v40, %v2152_v11  ;;  %v528_v1 = vrot.slane %v525_v42, 4 }
 0x1cb   : > { %v886_v34 = vrot.slane %v2182_v43, 4  ;;  %v529_v5 = vsel %vm320_vm0, 0.0, %v528_v1 }
 0x1ce   : > { %v930_v44 = vpop.trf.xlu0 }
 0x1cf   : > { %1307 = vxpose.xlu1.b32.start.end [1/1] (short) (narrow) %v930_v44, 8  ;;  %v1303_v45 = vrot.slane %v930_v44, 4  ;;  %v709_v44 = vsel %vm320_vm0, 0.0, %v708_v41 }
 0x1d1   : > { %1339 = vxpose.xlu2.b32.start.end [1/1] (short) (narrow) %v1303_v45, 8  ;;  %v887_v45 = vsel %vm320_vm0, 0.0, %v886_v34 }
 0x1d6   : > { %v931_v46 = vpop.trf.xlu0 }
 0x1d7   : > { %1371 = vxpose.xlu0.b32.start.end [1/1] (short) (narrow) %v931_v46, 8  ;;  %v1304_v47 = vrot.slane %v931_v46, 4  ;;  %v876_v46 = vrot.slane %v867_v35, 4 }
 0x1d9   : > { %1403 = vxpose.xlu1.b32.start.end [1/1] (short) (narrow) %v1304_v47, 8 }
 0x1de   : > { %v932_v48 = vpop.trf.xlu0 }
 0x1df   : > { %v1483_v49 = vrot.slane %v932_v48, 4 }
 0x1e1   : > { %1519 = vxpose.xlu1.b32.start.end [1/1] (short) (narrow) %v1483_v49, 8 }
 0x1e6   : > { %v933_v50 = vpop.trf.xlu0 }
 0x1e7   : > { %v1484_v51 = vrot.slane %v933_v50, 4 }
 0x1e9   : > { %1487 = vxpose.xlu1.b32.start.end [1/1] (short) (narrow) %v932_v48, 8  ;;  %1583 = vxpose.xlu0.b32.start.end [1/1] (short) (narrow) %v1484_v51, 8 }
 0x1f1   : > { %1551 = vxpose.xlu0.b32.start.end [1/1] (short) (narrow) %v933_v50, 8  ;;  %v877_v50 = vsel %vm320_vm0, %v873_v28, %v876_v46 }
 0x1f2   : > { %v885_v53 = vperm.slane %v877_v50, %v2152_v11 }
 0x1f4   : > { %v888_v20 = vrot.slane %v885_v53, 4 }
 0x1f6   : > { %v889_v29 = vsel %vm320_vm0, 0.0, %v888_v20 }
 0x23a   : > { %349 = vrot.lane.b32.xlu2 %v345_v22, %s2013_s20 }
 0x242   : > { %531 = vrot.lane.b32.xlu2 %v527_v31, %s2013_s20 }
 0x243   : > { %353 = vrot.lane.b32.xlu1 %v343_v37, %s2014_s21 }
 0x24a   : > { %719 = vrot.lane.b32.xlu2 %v709_v44, %s2015_s26 }
 0x24b   : > { %535 = vrot.lane.b32.xlu1 %v525_v42, %s2014_s21 }
 0x250   : > { %v1028_v47 = vpop.trf.xlu2 }
 0x251   : > { %v1076_v48 = vrot.slane %v1028_v47, 4 }
 0x252   : > { %891 = vrot.lane.b32.xlu2 %v887_v45, %s2013_s20 }
 0x253   : > { %715 = vrot.lane.b32.xlu1 %v705_v38, %s2014_s21  ;;  %v964_v49 = vpop.trf.xlu0 }
 0x254   : > { %v1077_v51 = vsel %vm320_vm0, %v1076_v48, %v964_v49 }
 0x255   : > { %v1081_v52 = vperm.slane %v1077_v51, %v2133_v26  ;;  %v996_v58 = vpop.trf.xlu1 }
 0x257   : > { %v1090_v56 = vrot.slane %v1081_v52, 4 }
 0x258   : > { %v1060_v54 = vpop.trf.xlu2 }
 0x259   : > { %v1082_v55 = vrot.slane %v1060_v54, 4 }
 0x25b   : > { %895 = vrot.lane.b32.xlu1 %v885_v53, %s2014_s21  ;;  %v1083_v59 = vsel %vm320_vm0, %v1082_v55, %v996_v58 }
 0x25c   : > { %v1087_v60 = vperm.slane %v1083_v59, %v2133_v26 }
 0x25e   : > { %v1091_v62 = vsel %vm320_vm0, %v1087_v60, %v1090_v56  ;;  %v1088_v17 = vrot.slane %v1087_v60, 4 }
 0x25f   : > { %357 = vrot.lane.b32.xlu0 %v347_v61, %s2015_s26  ;;  %v1099_v63 = vperm.slane %v1091_v62, %v2152_v11 }
 0x260   : > { %v1207_v2 = vpop.trf.xlu2  ;;  %v1089_v25 = vsel %vm320_vm0, %v1088_v17, %v1081_v52 }
 0x261   : > { %v1102_v0 = vrot.slane %v1099_v63, 4  ;;  %v1255_v6 = vrot.slane %v1207_v2, 4  ;;  %v2228_v31 = vperm.slane %v1089_v25, %v2152_v11 }
 0x263   : > { %1109 = vrot.lane.b32.xlu1 %v1099_v63, %s2014_s21  ;;  %v1103_v3 = vsel %vm320_vm0, 0.0, %v1102_v0  ;;  %v1143_v8 = vpop.trf.xlu1  ;;  %v1100_v35 = vrot.slane %v2228_v31, 4 }
 0x264   : > { %1113 = vrot.lane.b32.xlu2 %v1103_v3, %s2015_s26  ;;  %v1256_v9 = vsel %vm320_vm0, %v1255_v6, %v1143_v8 }
 0x265   : > { %v1175_v4 = vpop.trf.xlu0  ;;  %v1260_v13 = vperm.slane %v1256_v9, %v2133_v26  ;;  %v1101_v42 = vsel %vm320_vm0, 0.0, %v1100_v35 }
 0x267   : > { %539 = vrot.lane.b32.xlu0 %v529_v5, %s2015_s26  ;;  %v1269_v18 = vrot.slane %v1260_v13, 4 }
 0x26a   : > { %v1355_v40 = vpop.trf.xlu2 }
 0x26d   : > { %v1239_v12 = vpop.trf.xlu0 }
 0x26e   : > { %v1261_v14 = vrot.slane %v1239_v12, 4 }
 0x26f   : > { %711 = vrot.lane.b32.xlu0 %v707_v16, %s2013_s20 }
 0x270   : > { %v1262_v36 = vsel %vm320_vm0, %v1261_v14, %v1175_v4 }
 0x271   : > { %v1266_v19 = vperm.slane %v1262_v36, %v2133_v26 }
 0x273   : > { %v1267_v22 = vrot.slane %v1266_v19, 4  ;;  %v1323_v23 = vpop.trf.xlu1  ;;  %v1270_v24 = vsel %vm320_vm0, %v1266_v19, %v1269_v18 }
 0x274   : > { %v1278_v27 = vperm.slane %v1270_v24, %v2152_v11 }
 0x275   : > { %v1268_v28 = vsel %vm320_vm0, %v1267_v22, %v1260_v13 }
 0x276   : > { %v2224_v30 = vperm.slane %v1268_v28, %v2152_v11  ;;  %1288 = vrot.lane.b32.xlu2 %v1278_v27, %s2014_s21  ;;  %v1281_v47 = vrot.slane %v1278_v27, 4 }
 0x277   : > { %899 = vrot.lane.b32.xlu0 %v889_v29, %s2015_s26 }
 0x278   : > { %v1279_v32 = vrot.slane %v2224_v30, 4  ;;  %v1282_v51 = vsel %vm320_vm0, 0.0, %v1281_v47 }
 0x27a   : > { %v1280_v33 = vsel %vm320_vm0, 0.0, %v1279_v32 }
 0x27b   : > { %1284 = vrot.lane.b32.xlu1 %v1280_v33, %s2013_s20  ;;  %v1387_v37 = vpop.trf.xlu0 }
 0x27c   : > { %v1435_v38 = vrot.slane %v1387_v37, 4 }
 0x27d   : > { %v1419_v39 = vpop.trf.xlu1 }
 0x27e   : > { %v1441_v41 = vrot.slane %v1419_v39, 4  ;;  %v1436_v44 = vsel %vm320_vm0, %v1435_v38, %v1323_v23 }
 0x27f   : > { %1105 = vrot.lane.b32.xlu0 %v1101_v42, %s2013_s20  ;;  %v1440_v46 = vperm.slane %v1436_v44, %v2133_v26 }
 0x280   : > { %v1442_v34 = vsel %vm320_vm0, %v1441_v41, %v1355_v40 }
 0x281   : > { %v1446_v45 = vperm.slane %v1442_v34, %v2133_v26  ;;  %v1449_v50 = vrot.slane %v1440_v46, 4 }
 0x283   : > { %v1447_v48 = vrot.slane %v1446_v45, 4  ;;  %v1450_v55 = vsel %vm320_vm0, %v1446_v45, %v1449_v50 }
 0x284   : > { %v1458_v58 = vperm.slane %v1450_v55, %v2152_v11 }
 0x285   : > { %v1448_v49 = vsel %vm320_vm0, %v1447_v48, %v1440_v46  ;;  %v1535_v56 = vpop.trf.xlu1 }
 0x286   : > { %v2244_v52 = vperm.slane %v1448_v49, %v2152_v11 }
 0x287   : > { %1292 = vrot.lane.b32.xlu0 %v1282_v51, %s2015_s26 }
 0x288   : > { %v1459_v53 = vrot.slane %v2244_v52, 4 }
 0x28a   : > { %v1460_v54 = vsel %vm320_vm0, 0.0, %v1459_v53 }
 0x28b   : > { %1464 = vrot.lane.b32.xlu2 %v1460_v54, %s2013_s20 }
 0x28d   : > { %v1599_v57 = vpop.trf.xlu0  ;;  %v1503_v63 = vpop.trf.xlu1 }
 0x28e   : > { %v1621_v59 = vrot.slane %v1599_v57, 4 }
 0x28f   : > { %1468 = vrot.lane.b32.xlu0 %v1458_v58, %s2014_s21 }
 0x290   : > { %v1622_v60 = vsel %vm320_vm0, %v1621_v59, %v1535_v56 }
 0x291   : > { %v1626_v61 = vperm.slane %v1622_v60, %v2133_v26 }
 0x293   : > { %v1627_v2 = vrot.slane %v1626_v61, 4 }
 0x295   : > { %v1567_v62 = vpop.trf.xlu0 }
 0x296   : > { %v1615_v0 = vrot.slane %v1567_v62, 4 }
 0x298   : > { %v1616_v1 = vsel %vm320_vm0, %v1615_v0, %v1503_v63 }
 0x299   : > { %v1620_v3 = vperm.slane %v1616_v1, %v2133_v26  ;;  %v1461_v26 = vrot.slane %v1458_v58, 4 }
 0x29b   : > { %v1629_v4 = vrot.slane %v1620_v3, 4  ;;  %v1628_v5 = vsel %vm320_vm0, %v1627_v2, %v1620_v3  ;;  %v1462_v14 = vsel %vm320_vm0, 0.0, %v1461_v26 }
 0x29c   : > { %v2259_v6 = vperm.slane %v1628_v5, %v2152_v11 }
 0x29d   : > { %v1630_v8 = vsel %vm320_vm0, %v1626_v61, %v1629_v4 }
 0x29e   : > { %v1638_v9 = vperm.slane %v1630_v8, %v2152_v11  ;;  %v1639_v10 = vrot.slane %v2259_v6, 4  ;;  %v350_v11 = vpop.permute.xlu2 %349 }
 0x29f   : > { %v361_v20 = vsel %vm360_vm1, %v2157_v15, %v350_v11 }
 0x2a0   : > { %1648 = vrot.lane.b32.xlu2 %v1638_v9, %s2014_s21  ;;  %v1640_v12 = vsel %vm320_vm0, 0.0, %v1639_v10  ;;  %v1641_v13 = vrot.slane %v1638_v9, 4 }
 0x2a1   : > { %1644 = vrot.lane.b32.xlu1 %v1640_v12, %s2013_s20 }
 0x2a2   : > { %v1642_v16 = vsel %vm320_vm0, 0.0, %v1641_v13 }
 0x2a6   : > { %v532_v18 = vpop.permute.xlu2 %531 }
 0x2a7   : > { %v542_v27 = vsel %vm360_vm1, %v2162_v21, %v532_v18 }
 0x2a8   : > { %1472 = vrot.lane.b32.xlu2 %v1462_v14, %s2015_s26 }
 0x2a9   : > { %1652 = vrot.lane.b32.xlu1 %v1642_v16, %s2015_s26  ;;  %s1931_s26 = scalar_lea.hbm %s2369_s1, 128 }
 0x2aa   : > { %p1933_p8 = scmp.lt.s32.totalorder %s1931_s26, %s1927_s28 }
 0x2ac   : > { %p1934_p10 = por %p1933_p8, %p1932_p7 }
 0x2ae   : > { %v720_v19 = vpop.permute.xlu2 %719  ;;  %p1935_p11 = pnand %p1934_p10, %p1930_p6 }
 0x2b5   : > { %v354_v17 = vpop.permute.xlu1 %353 }
 0x2b6   : > { %v363_v22 = vsel %vm362_vm2, %v361_v20, %v354_v17  ;;  %v892_v28 = vpop.permute.xlu2 %891 }
 0x2b7   : > { %v902_v40 = vsel %vm360_vm1, %v2182_v43, %v892_v28 }
 0x2bd   : > { %v536_v36 = vpop.permute.xlu1 %535 }
 0x2be   : > { %v543_v15 = vsel %vm362_vm2, %v542_v27, %v536_v36  ;;  %v1114_v33 = vpop.permute.xlu2 %1113 }
 0x2c5   : > { %v716_v25 = vpop.permute.xlu1 %715 }
 0x2cd   : > { %v896_v35 = vpop.permute.xlu1 %895 }
 0x2ce   : > { %v903_v41 = vsel %vm362_vm2, %v902_v40, %v896_v35 }
 0x2d0   : > { %v1289_v34 = vpop.permute.xlu2 %1288 }
 0x2d1   : > { %v358_v23 = vpop.permute.xlu0 %357 }
 0x2d2   : > { %v365_v24 = vsel %vm364_vm3, %v363_v22, %v358_v23 }
 0x2d3   : > { %367 = vst.msk [vmem:[%s2276_s2] sm:$0xf] %vm366_vm4, %v365_v24 }
 0x2d5   : > { %v1110_v42 = vpop.permute.xlu1 %1109 }
 0x2d9   : > { %v540_v29 = vpop.permute.xlu0 %539 }
 0x2da   : > { %v544_v32 = vsel %vm364_vm3, %v543_v15, %v540_v29 }
 0x2db   : > { %1782 = vst.msk [vmem:[%s2276_s2 + $0x8] sm:$0xf] %vm366_vm4, %v544_v32 }
 0x2e1   : > { %v712_v37 = vpop.permute.xlu0 %711 }
 0x2e2   : > { %v722_v38 = vsel %vm360_vm1, %v2208_v7, %v712_v37 }
 0x2e3   : > { %v723_v39 = vsel %vm362_vm2, %v722_v38, %v716_v25 }
 0x2e4   : > { %v724_v21 = vsel %vm364_vm3, %v723_v39, %v720_v19 }
 0x2e5   : > { %1783 = vst.msk [vmem:[%s2276_s2 + $0x10] sm:$0xf] %vm366_vm4, %v724_v21  ;;  %v1465_v46 = vpop.permute.xlu2 %1464 }
 0x2e6   : > { %v1475_v55 = vsel %vm360_vm1, %v2244_v52, %v1465_v46 }
 0x2e9   : > { %v900_v44 = vpop.permute.xlu0 %899 }
 0x2ea   : > { %v904_v45 = vsel %vm364_vm3, %v903_v41, %v900_v44 }
 0x2eb   : > { %1784 = vst.msk [vmem:[%s2276_s2 + $0x18] sm:$0xf] %vm366_vm4, %v904_v45 }
 0x2ed   : > { %v1285_v48 = vpop.permute.xlu1 %1284 }
 0x2ee   : > { %v1295_v50 = vsel %vm360_vm1, %v2224_v30, %v1285_v48 }
 0x2ef   : > { %v1296_v51 = vsel %vm362_vm2, %v1295_v50, %v1289_v34 }
 0x2f1   : > { %v1106_v7 = vpop.permute.xlu0 %1105 }
 0x2f2   : > { %v1116_v47 = vsel %vm360_vm1, %v2228_v31, %v1106_v7 }
 0x2f3   : > { %v1117_v43 = vsel %vm362_vm2, %v1116_v47, %v1110_v42 }
 0x2f4   : > { %v1118_v49 = vsel %vm364_vm3, %v1117_v43, %v1114_v33 }
 0x2f5   : > { %1786 = vst.msk [vmem:[%s2276_s2 + $0x4] sm:$0xf] %vm366_vm4, %v1118_v49 }
 0x2f9   : > { %v1293_v53 = vpop.permute.xlu0 %1292 }
 0x2fa   : > { %v1297_v54 = vsel %vm364_vm3, %v1296_v51, %v1293_v53  ;;  %v1649_v31 = vpop.permute.xlu2 %1648 }
 0x2fb   : > { %1787 = vst.msk [vmem:[%s2276_s2 + $0xc] sm:$0xf] %vm366_vm4, %v1297_v54 }
 0x301   : > { %v1469_v56 = vpop.permute.xlu0 %1468 }
 0x302   : > { %v1476_v57 = vsel %vm362_vm2, %v1475_v55, %v1469_v56  ;;  %v1473_v58 = vpop.permute.xlu2 %1472 }
 0x303   : > { %v1477_v59 = vsel %vm364_vm3, %v1476_v57, %v1473_v58 }
 0x304   : > { %1788 = vst.msk [vmem:[%s2276_s2 + $0x14] sm:$0xf] %vm366_vm4, %v1477_v59 }
 0x313   : > { %v1645_v30 = vpop.permute.xlu1 %1644 }
 0x314   : > { %v1655_v52 = vsel %vm360_vm1, %v2259_v6, %v1645_v30 }
 0x315   : > { %v1656_v60 = vsel %vm362_vm2, %v1655_v52, %v1649_v31 }
 0x31b   : > { %v1653_v61 = vpop.permute.xlu1 %1652 }
 0x31c   : > { %v1657_v62 = vsel %vm364_vm3, %v1656_v60, %v1653_v61 }
 0x31d   : > { %1789 = vst.msk [vmem:[%s2276_s2 + $0x1c] sm:$0xf] %vm366_vm4, %v1657_v62 }
 0x31e   : > { %1938 = shalt.err (!%p1935_p11)
}
 0x31f   : > { %s2016_s18 = smov 128   ;;  %s2017_s2 = smov 256  }
 0x320   : > { %1797 = dma.vmem_to_hbm [thread:$0]  (%p2093_p9), %s1676_s23, 512, %s1678_s24, %s1662_s9, %s2016_s18, %s2017_s2, %s2014_s21  }
 0x321 PF: > { %p1808_p13 = scmp.ge.s32.totalorder %s2009_s13, 2  ;;  %s1692_s4 = sand.u32 1, %s1981_s6  }
 0x322   : > { %s1693_s5 = scalar_lea.sflag [#allocation4], %s1692_s4 }
 0x323   : > { %p1804_p0 = pnand %p1808_p13, %p2099_p12 }
 0x325   : > { %p1805_p1 = pneg %p1804_p0 }
 0x327   : > { %1976 = dma.done.wait (%p1805_p1), %s1693_s5, 512  }
 0x328   : > { %1978 = vsyncadd (%p1805_p1), %s1693_s5, 4294966784  ;;  %s17_s13 = sadd.s32 1, %s2009_s13   ;;  %s2374_s6 = smov %s1985_s7 }
 0x329   : > { %p14_p2 = scmp.ge.s32.totalorder %s17_s13, 6   ;;  %s2375_s7 = smov %s1989_s8 }
 0x32a   : > { %s2376_s8 = smov %s2106_s27  ;;  %s2377_s9 = smov %s2001_s11 }
 0x32b   : > { %s2378_s10 = smov %s2005_s12  ;;  %s2379_s11 = smov %s2382_s16 }
 0x32c   : > { %s2380_s12 = smov %s2386_s17  ;;  %16 = sbr.rel (!%p14_p2) target bundleno = 7 (0x7), region = 77 }
 0x331   :  { %1699 = vsyncpa [#allocation3], 1 }
 0x332   :  { %1701 = vsyncpa [#allocation3 + $0x1], 1 }
 0x333   :  { %1702 = vsyncpa [#allocation4], 1 }
 0x334   :  { %1704 = vsyncpa [#allocation4 + $0x1], 1 }

</bundles_post_ra>
